<compile_context>
chip_gen: v7x
topology: tpu7x:2x2x1
jax: 0.10.0
libtpu: 0.0.40
codegen_flags: <defaults>
</compile_context>

<pallas_src>
import jax
import jax.numpy as jnp
from jax.experimental import pallas as pl
from jax.experimental.pallas import tpu as pltpu

LANE = 128      # vreg lane width (last dim)
SUBLANE = 8     # vreg sublane width (second-to-last dim)

_VMEM_SPEC = pl.BlockSpec(memory_space=pltpu.MemorySpace.VMEM)


def _round_up(x, m):
    return ((x + m - 1) // m) * m


def _pad2d(a, rows, cols):
    """Zero-pad a 2-D array up to (rows, cols)."""
    return jnp.pad(a, ((0, rows - a.shape[0]), (0, cols - a.shape[1])))


# ----------------------------- kernels ---------------------------------------


def _linear_classifier_kernel(x_ref, w1_ref, b1_ref, w2_ref, b2_ref,
                              preds_ref, out1_ref):
    """Fused Linear -> Dropout(eval identity) -> Linear.

    Operands are zero-padded to lane-dense widths by the wrapper, so both stores
    are unmasked full-lane stores and padded weight rows/cols contribute zero.
    """
    x = x_ref[...]
    out1 = jnp.dot(x, w1_ref[...], preferred_element_type=jnp.float32) + b1_ref[...]
    out1_ref[...] = out1
    # TODO(synk): nn.Dropout(0.5) is training-only stochastic; eval-mode identity here.
    preds_ref[...] = (
        jnp.dot(out1, w2_ref[...], preferred_element_type=jnp.float32) + b2_ref[...]
    )


def _cosine_classifier_kernel(x_ref, reps_ref, preds_ref, reps_norm_ref):
    """Fused F.normalize(class_reps, p=2, dim=1) -> x @ class_reps."""
    reps = reps_ref[...]
    nrm = jnp.sqrt(jnp.sum(reps * reps, axis=1, keepdims=True))
    reps_n = reps / jnp.maximum(nrm, jnp.float32(1e-12))   # F.normalize eps
    reps_norm_ref[...] = reps_n
    preds_ref[...] = jnp.dot(x_ref[...], reps_n, preferred_element_type=jnp.float32)


# ----------------------------- wrappers ---------------------------------------


@jax.jit
def classifier_forward_linear(x, w1, b1, w2, b2):
    """ClassifierLayer('linear').forward -> (preds, out1)."""
    n, d = x.shape
    h = w1.shape[1]
    c = w2.shape[1]

    n_p = _round_up(n, SUBLANE)
    h_p = _round_up(h, LANE)
    c_p = _round_up(c, LANE)

    x_p = _pad2d(x.astype(jnp.float32), n_p, d)
    w1_p = _pad2d(w1.astype(jnp.float32), d, h_p)
    b1_p = _pad2d(b1.astype(jnp.float32), 1, h_p)
    w2_p = _pad2d(w2.astype(jnp.float32), h_p, c_p)
    b2_p = _pad2d(b2.astype(jnp.float32), 1, c_p)

    preds_p, out1_p = pl.pallas_call(
        _linear_classifier_kernel,
        out_shape=(jax.ShapeDtypeStruct((n_p, c_p), jnp.float32),
                   jax.ShapeDtypeStruct((n_p, h_p), jnp.float32)),
        in_specs=[_VMEM_SPEC] * 5,
        out_specs=(_VMEM_SPEC, _VMEM_SPEC),
    )(x_p, w1_p, b1_p, w2_p, b2_p)

    return preds_p[:n, :c], out1_p[:n, :h]


@jax.jit
def classifier_forward_cosine(x, class_reps):
    """ClassifierLayer(type != 'linear').forward.

    Returns (preds, class_reps_normalized); the second output mirrors the
    in-place `self.class_reps.data = F.normalize(...)` of the PyTorch module.
    """
    n, d = x.shape
    c = class_reps.shape[1]

    n_p = _round_up(n, SUBLANE)
    c_p = _round_up(c, LANE)

    # Zero-padding the class columns does not change any row's L2 norm, and the
    # padded columns stay exactly zero after normalization.
    x_p = _pad2d(x.astype(jnp.float32), n_p, d)
    reps_p = _pad2d(class_reps.astype(jnp.float32), d, c_p)

    preds_p, reps_norm_p = pl.pallas_call(
        _cosine_classifier_kernel,
        out_shape=(jax.ShapeDtypeStruct((n_p, c_p), jnp.float32),
                   jax.ShapeDtypeStruct((d, c_p), jnp.float32)),
        in_specs=[_VMEM_SPEC, _VMEM_SPEC],
        out_specs=(_VMEM_SPEC, _VMEM_SPEC),
    )(x_p, reps_p)

    return preds_p[:n, :c], reps_norm_p[:, :c]


# ----------------------------- demo -------------------------------------------

if __name__ == "__main__":
    key = jax.random.PRNGKey(0)

    N = 8                    # rows fed to the classifier (e.g. graphs in a batch)
    final_gat_out_dim = 32
    num_classes = 5
    hidden = final_gat_out_dim // 2

    kx, kw1, kb1, kw2, kb2, kr = jax.random.split(key, 6)
    x = jax.random.normal(kx, (N, final_gat_out_dim), jnp.float32)

    # 'linear' mode parameters ([in, out] = nn.Linear.weight.T, bias [1, out]).
    w1 = 0.1 * jax.random.normal(kw1, (final_gat_out_dim, hidden), jnp.float32)
    b1 = 0.1 * jax.random.normal(kb1, (1, hidden), jnp.float32)
    w2 = 0.1 * jax.random.normal(kw2, (hidden, num_classes), jnp.float32)
    b2 = 0.1 * jax.random.normal(kb2, (1, num_classes), jnp.float32)

    # prototype ('else') mode parameter.
    class_reps = jax.random.normal(kr, (final_gat_out_dim, num_classes), jnp.float32)

    preds, out1 = classifier_forward_linear(x, w1, b1, w2, b2)
    preds_cos, reps_norm = classifier_forward_cosine(x, class_reps)
    jax.block_until_ready((preds, out1, preds_cos, reps_norm))

    # Pure-JAX reference check (eval-mode semantics).
    out1_ref = x @ w1 + b1
    preds_ref = out1_ref @ w2 + b2
    reps_n_ref = class_reps / jnp.maximum(
        jnp.linalg.norm(class_reps, axis=1, keepdims=True), 1e-12)
    preds_cos_ref = x @ reps_n_ref

    assert preds.shape == (N, num_classes)
    assert out1.shape == (N, hidden)
    assert preds_cos.shape == (N, num_classes)
    assert reps_norm.shape == (final_gat_out_dim, num_classes)
    assert jnp.allclose(preds, preds_ref, atol=1e-5, rtol=1e-5)
    assert jnp.allclose(out1, out1_ref, atol=1e-5, rtol=1e-5)
    assert jnp.allclose(preds_cos, preds_cos_ref, atol=1e-5, rtol=1e-5)
    assert jnp.allclose(reps_norm, reps_n_ref, atol=1e-5, rtol=1e-5)
    print("KERNEL_OK")
</pallas_src>

<mosaic_0001>
module attributes {stable_mosaic.version = 11 : i64} {
  func.func @_linear_classifier_kernel(%arg0: memref<8x32xf32, #tpu.memory_space<vmem>>, %arg1: memref<32x128xf32, #tpu.memory_space<vmem>>, %arg2: memref<1x128xf32, #tpu.memory_space<vmem>>, %arg3: memref<128x128xf32, #tpu.memory_space<vmem>>, %arg4: memref<1x128xf32, #tpu.memory_space<vmem>>, %arg5: memref<8x128xf32, #tpu.memory_space<vmem>>, %arg6: memref<8x128xf32, #tpu.memory_space<vmem>>) attributes {dimension_semantics = [], scalar_prefetch = 0 : i64, scratch_operands = 0 : i64, tpu.core_type = #tpu.core_type<tc>} {
    %c0 = arith.constant 0 : index
    %c0_0 = arith.constant 0 : index
    %0 = vector.load %arg0[%c0, %c0_0] : memref<8x32xf32, #tpu.memory_space<vmem>>, vector<8x32xf32>
    %c0_1 = arith.constant 0 : index
    %c0_2 = arith.constant 0 : index
    %1 = vector.load %arg1[%c0_1, %c0_2] : memref<32x128xf32, #tpu.memory_space<vmem>>, vector<32x128xf32>
    %cst = arith.constant dense<0.000000e+00> : vector<8x128xf32>
    %2 = tpu.matmul %0, %1, %cst {dimension_numbers = #tpu.dot_dimension_numbers<[1], [0], [0], [1], [0, 0, 1, 1], [], []>} : vector<8x32xf32>, vector<32x128xf32>, vector<8x128xf32> -> vector<8x128xf32>
    %c0_3 = arith.constant 0 : index
    %c0_4 = arith.constant 0 : index
    %3 = vector.load %arg2[%c0_3, %c0_4] : memref<1x128xf32, #tpu.memory_space<vmem>>, vector<1x128xf32>
    %4 = vector.broadcast %3 : vector<1x128xf32> to vector<8x128xf32>
    %5 = arith.addf %2, %4 : vector<8x128xf32>
    %c0_5 = arith.constant 0 : index
    %c0_6 = arith.constant 0 : index
    %6 = vector.load %arg6[%c0_5, %c0_6] : memref<8x128xf32, #tpu.memory_space<vmem>>, vector<8x128xf32>
    tpu.vector_store %arg6[%c0_5, %c0_6], %5 {strides = array<i32>} : memref<8x128xf32, #tpu.memory_space<vmem>>, vector<8x128xf32>,
    %c0_7 = arith.constant 0 : index
    %c0_8 = arith.constant 0 : index
    %7 = vector.load %arg3[%c0_7, %c0_8] : memref<128x128xf32, #tpu.memory_space<vmem>>, vector<128x128xf32>
    %cst_9 = arith.constant dense<0.000000e+00> : vector<8x128xf32>
    %8 = tpu.matmul %5, %7, %cst_9 {dimension_numbers = #tpu.dot_dimension_numbers<[1], [0], [0], [1], [0, 0, 1, 1], [], []>} : vector<8x128xf32>, vector<128x128xf32>, vector<8x128xf32> -> vector<8x128xf32>
    %c0_10 = arith.constant 0 : index
    %c0_11 = arith.constant 0 : index
    %9 = vector.load %arg4[%c0_10, %c0_11] : memref<1x128xf32, #tpu.memory_space<vmem>>, vector<1x128xf32>
    %10 = vector.broadcast %9 : vector<1x128xf32> to vector<8x128xf32>
    %11 = arith.addf %8, %10 : vector<8x128xf32>
    %c0_12 = arith.constant 0 : index
    %c0_13 = arith.constant 0 : index
    %12 = vector.load %arg5[%c0_12, %c0_13] : memref<8x128xf32, #tpu.memory_space<vmem>>, vector<8x128xf32>
    tpu.vector_store %arg5[%c0_12, %c0_13], %11 {strides = array<i32>} : memref<8x128xf32, #tpu.memory_space<vmem>>, vector<8x128xf32>,
    return
  }
}

</mosaic_0001>

<bundles_post_ra>
// kernel: classifier_forward_linear.1
= control target key start
LH: loop header
LB: loop body
LE: loop exit
PB: predicated region body
PF: predicated region fallthrough
CT: control target
= control target key end

     0   :  { %12 = vsyncpa [#allocation3], 0  ;;  %v387_v3 = vmov 0.0|0.0   ;;  %vm388_vm0 = vmmov 0   ;;  %v389_v6 = vmov 0.0   ;;  %s520_s0 = inlined_call_operand.vmem [shape: f32[8,32], index: 0, kind: input, shape index: {}]   ;;  %s521_s1 = inlined_call_operand.vmem [shape: f32[32,128], index: 1, kind: input, shape index: {}]   ;;  %s522_s2 = inlined_call_operand.vmem [shape: f32[1,128], index: 2, kind: input, shape index: {}]   ;;  %s523_s3 = inlined_call_operand.vmem [shape: f32[128,128], index: 3, kind: input, shape index: {}]   ;;  %s524_s4 = inlined_call_operand.vmem [shape: f32[1,128], index: 4, kind: input, shape index: {}]   ;;  %s525_s5 = inlined_call_operand.hbm [shape: f32[8,128], index: 5, kind: output, shape index: {0}]   ;;  %s526_s6 = inlined_call_operand.hbm [shape: f32[8,128], index: 6, kind: output, shape index: {1}]  }
   0x1   :  { %v25_v0 = vld [vmem:[%s521_s1] sm:$0xff]  ;;  %v26_v1 = vld [vmem:[%s521_s1 + $0x8] sm:$0xff]  ;;  %v27_v2 = vld [vmem:[%s521_s1 + $0x10] sm:$0xff]  ;;  %304 = vmatprep.subr.bf16.mxu0 %v387_v3  ;;  %266 = vmatprep.mubr.msk.f32.mxu0 %vm388_vm0, %v389_v6 }
   0x2   :  { %v305_v4 = vpack.c.bf16 %v26_v1, %v25_v0  ;;  %v28_v5 = vld [vmem:[%s521_s1 + $0x18] sm:$0xff]  ;;  %v111_v7 = vld [vmem:[%s523_s3] sm:$0xff]  ;;  %310 = vmatprep.subr.bf16.mxu1 %v387_v3  ;;  %v112_v8 = vld [vmem:[%s523_s3 + $0x8] sm:$0xff]  ;;  %301 = vmatprep.mubr.msk.f32.mxu1 %vm388_vm0, %v389_v6 }
   0x3   :  { %v113_v9 = vld [vmem:[%s523_s3 + $0x10] sm:$0xff]  ;;  %v114_v10 = vld [vmem:[%s523_s3 + $0x18] sm:$0xff]  ;;  %v308_v11 = vpack.c.bf16 %v28_v5, %v27_v2  ;;  %v311_v12 = vpack.c.bf16 %v112_v8, %v111_v7  ;;  %v115_v14 = vld [vmem:[%s523_s3 + $0x20] sm:$0xff] }
   0x4   :  { %306 = vmatpush3.bf16.msra.mxu0 %v305_v4  ;;  %v314_v13 = vpack.c.bf16 %v114_v10, %v113_v9  ;;  %v116_v15 = vld [vmem:[%s523_s3 + $0x28] sm:$0xff] }
   0x5   :  { %307 = vmatprep.subr.bf16.mxu0 %v387_v3  ;;  %312 = vmatpush3.bf16.msra.mxu1 %v311_v12 }
   0x6   :  { %313 = vmatprep.subr.bf16.mxu1 %v387_v3 }
   0x7   :  { %13 = vsyncpa [#allocation5], 0  ;;  %v24_v16 = vld [vmem:[%s520_s0] sm:$0xff]  ;;  %vm36_vm1 = vcmask 261120   ;;  %v317_v17 = vpack.c.bf16 %v116_v15, %v115_v14  ;;  %v117_v18 = vld [vmem:[%s523_s3 + $0x30] sm:$0xff]  ;;  %s390_s14 = smov [#allocation4]  }
   0x8   :  { %309 = vmatpush3.bf16.msra.mxu0 %v308_v11  ;;  %v118_v19 = vld [vmem:[%s523_s3 + $0x38] sm:$0xff]  ;;  %v119_v21 = vld [vmem:[%s523_s3 + $0x40] sm:$0xff]  ;;  %v120_v22 = vld [vmem:[%s523_s3 + $0x48] sm:$0xff]  ;;  %s221_s15 = sshll.u32 %s390_s14, 4  ;;  %s222_s15 = int_to_ptr.vmem [resolvable:$true] %s221_s15 }
   0x9   :  { %315 = vmatpush3.bf16.msra.mxu1 %v314_v13  ;;  %v320_v20 = vpack.c.bf16 %v118_v19, %v117_v18  ;;  %v323_v23 = vpack.c.bf16 %v120_v22, %v119_v21  ;;  %v121_v24 = vld [vmem:[%s523_s3 + $0x50] sm:$0xff]  ;;  %v122_v25 = vld [vmem:[%s523_s3 + $0x58] sm:$0xff]  ;;  %v123_v27 = vld [vmem:[%s523_s3 + $0x60] sm:$0xff]  ;;  %s339_s16 = scalar_lea.vmem %s222_s15, 128  ;;  %p344_p1 = scmp.lt.s32.totalorder %s222_s15, %s222_s15 }
   0xa   :  { %316 = vmatprep.subr.bf16.mxu1 %v387_v3  ;;  %v326_v26 = vpack.c.bf16 %v122_v25, %v121_v24  ;;  %v124_v28 = vld [vmem:[%s523_s3 + $0x68] sm:$0xff]  ;;  %v125_v30 = vld [vmem:[%s523_s3 + $0x70] sm:$0xff]  ;;  %v126_v31 = vld [vmem:[%s523_s3 + $0x78] sm:$0xff]  ;;  %p340_p0 = scmp.ne.s32.totalorder %s222_s15, %s339_s16  ;;  %p345_p2 = scmp.lt.s32.totalorder %s339_s16, %s339_s16 }
   0xb   :  { %267 = vmatmul.mubr.msk.f32.vlgmr.msra.gmra.mrb[0].mxu0 %vm36_vm1, %v24_v16  ;;  %v329_v29 = vpack.c.bf16 %v124_v28, %v123_v27  ;;  %v332_v32 = vpack.c.bf16 %v126_v31, %v125_v30  ;;  %v233_v33 = vld [vmem:[%s522_s2] ss:$0 sm:$0xff] }
   0xc   :  { %p346_p3 = por %p345_p2, %p344_p1 }
   0xd   :  { %318 = vmatpush3.bf16.msra.mxu1 %v317_v17 }
   0xe   :  { %319 = vmatprep.subr.bf16.mxu1 %v387_v3  ;;  %p347_p4 = pnand %p346_p3, %p340_p0 }
  0x11   :  { %321 = vmatpush3.bf16.msra.mxu1 %v320_v20 }
  0x12   :  { %322 = vmatprep.subr.bf16.mxu1 %v387_v3 }
  0x15   :  { %324 = vmatpush3.bf16.msra.mxu1 %v323_v23 }
  0x16   :  { %325 = vmatprep.subr.bf16.mxu1 %v387_v3 }
  0x19   :  { %327 = vmatpush3.bf16.msra.mxu1 %v326_v26 }
  0x1a   :  { %328 = vmatprep.subr.bf16.mxu1 %v387_v3 }
  0x1d   :  { %330 = vmatpush3.bf16.msra.mxu1 %v329_v29 }
  0x1e   :  { %331 = vmatprep.subr.bf16.mxu1 %v387_v3 }
  0x21   :  { %333 = vmatpush3.bf16.msra.mxu1 %v332_v32 }
  0xde   :  { %v106_v34 = vpop.f32.mrb[0].mxu0 }
  0xdf   :  { %v107_v35 = vadd.f32 %v233_v33, %v106_v34  ;;  %v268_v36 = vpop.f32.mrb[1].mxu0 }
  0xe1   :  { %110 = vst [vmem:[#allocation4] sm:$0xff] %v107_v35  ;;  %302 = vmatmul.mubr.f32.vlgmr.msra.gmra.mrb[0].mxu1 %v107_v35 }
  0xe2   :  { %350 = shalt.err (!%p347_p4)
}
  0xe3   :  { %s351_s18 = scalar_lea.hbm %s526_s6, 128 }
  0xe4   :  { %p352_p5 = scmp.ne.s32.totalorder %s526_s6, %s351_s18  ;;  %p355_p6 = scmp.lt.u32.totalorder %s351_s18, %s526_s6 }
  0xe6   :  { %p357_p7 = pnand %p355_p6, %p352_p5 }
  0xe8   :  { %360 = shalt.err (!%p357_p7)
}
  0xe9   :  { %224 = dma.vmem_to_hbm [thread:$0]  %s222_s15, 128, %s526_s6, [#allocation5]   ;;  %v235_v37 = vld [vmem:[%s524_s4] ss:$0 sm:$0xff] }
  0xea   :  { %s391_s25 = smov [#allocation2]  }
  0xeb   :  { %s211_s26 = sshll.u32 %s391_s25, 4  ;;  %s212_s26 = int_to_ptr.vmem [resolvable:$true] %s211_s26 }
  0xec   :  { %s361_s27 = scalar_lea.vmem %s212_s26, 128  ;;  %p366_p9 = scmp.lt.s32.totalorder %s212_s26, %s212_s26 }
  0xed   :  { %p362_p8 = scmp.ne.s32.totalorder %s212_s26, %s361_s27  ;;  %p367_p10 = scmp.lt.s32.totalorder %s361_s27, %s361_s27 }
  0xef   :  { %p368_p11 = por %p367_p10, %p366_p9 }
  0xf1   :  { %p369_p12 = pnand %p368_p11, %p362_p8 }
 0x1b4   :  { %v200_v38 = vpop.f32.mrb[0].mxu1 }
 0x1b5   :  { %v201_v39 = vadd.f32 %v235_v37, %v200_v38  ;;  %v303_v40 = vpop.f32.mrb[1].mxu1 }
 0x1b7   :  { %204 = vst [vmem:[#allocation2] sm:$0xff] %v201_v39 }
 0x1b8   :  { %372 = shalt.err (!%p369_p12)
}
 0x1b9   :  { %s373_s29 = scalar_lea.hbm %s525_s5, 128 }
 0x1ba   :  { %p374_p13 = scmp.ne.s32.totalorder %s525_s5, %s373_s29  ;;  %p377_p0 = scmp.lt.u32.totalorder %s373_s29, %s525_s5 }
 0x1bc   :  { %p379_p1 = pnand %p377_p0, %p374_p13 }
 0x1be   :  { %382 = shalt.err (!%p379_p1)
}
 0x1bf   :  { %214 = dma.vmem_to_hbm [thread:$0]  %s212_s26, 128, %s525_s5, [#allocation3]  }
 0x1c0   :  { %383 = dma.done.wait [#allocation3], 128  }
 0x1c1   :  { %384 = vsyncadd [#allocation3], 4294967168 }
 0x1c2   :  { %385 = dma.done.wait [#allocation5], 128  }
 0x1c3   :  { %386 = vsyncadd [#allocation5], 4294967168 }
 0x1c4   :  { %231 = vsyncpa [#allocation3], 1 }
 0x1c5   :  { %232 = vsyncpa [#allocation5], 1 }

</bundles_post_ra>
